<compile_context>
chip_gen: v7x
topology: tpu7x:2x2x1
jax: 0.10.0
libtpu: 0.0.40
codegen_flags: <defaults>
</compile_context>

<pallas_src>
from functools import partial

import jax
import jax.numpy as jnp
from jax import lax
from jax.experimental import pallas as pl
from jax.experimental.pallas import tpu as pltpu


def _round_up(n, m):
    return ((n + m - 1) // m) * m


# --------------------------------------------------------------------------
# Pallas kernel
# --------------------------------------------------------------------------
def _convlstm_kernel(p_ref, w_ref, c_ref, hc_ref, *, Chid):
    # p_ref  : (TM, Kp)        im2col patches (+ ones column for the bias)
    # w_ref  : (Kp, 4*Chid)    conv weights with the bias folded in as a row
    # c_ref  : (TM, Chid)      current cell state (f32)
    # hc_ref : (TM, 2*Chid)    output block: [h_next | c_next]
    acc = jnp.dot(p_ref[...], w_ref[...],
                  preferred_element_type=jnp.float32)        # (TM, 4*Chid) f32

    # Gate nonlinearities on the full 128-lane slab with a single EUP tanh
    # pass: sigmoid(x) = 0.5*tanh(0.5*x)+0.5 (no VALU divide); the 'g' lanes
    # get a plain tanh, selected with a broadcasted-iota lane mask.
    lane = lax.broadcasted_iota(jnp.int32, acc.shape, 1)
    is_g = (lane >= 2 * Chid) & (lane < 3 * Chid)
    th = jnp.tanh(jnp.where(is_g, acc, 0.5 * acc))
    act = jnp.where(is_g, th, 0.5 * th + 0.5)   # [sig(i) sig(f) tanh(g) sig(o)]

    i = act[:, 0 * Chid:1 * Chid]
    f = act[:, 1 * Chid:2 * Chid]
    g = act[:, 2 * Chid:3 * Chid]
    o = act[:, 3 * Chid:4 * Chid]

    c_next = f * c_ref[...] + i * g
    h_next = o * jnp.tanh(c_next)
    hc_ref[...] = jnp.concatenate([h_next, c_next], axis=-1)


# --------------------------------------------------------------------------
# Wrapper-side preparation (glue, hoistable out of rollouts)
# --------------------------------------------------------------------------
def prepare_conv_weights(weight, bias, compute_dtype=jnp.bfloat16):
    """OIHW conv weight + bias -> im2col weight matrix (Kp, 4*Chid).

    Row order along K is ((kh*KW + kw)*C + c), followed by one bias row
    (matched by a ones-column in the patches), zero-padded up to a multiple
    of 128.  Constant for a whole rollout -- hoist out of timestep loops.
    """
    out4, C, KH, KW = weight.shape
    K = KH * KW * C
    Kp = _round_up(K + 1, 128)
    w2d = jnp.transpose(weight, (2, 3, 1, 0)).reshape(K, out4).astype(jnp.float32)
    w_full = jnp.zeros((Kp, out4), jnp.float32)
    w_full = w_full.at[:K, :].set(w2d)
    w_full = w_full.at[K, :].set(bias.astype(jnp.float32))
    return w_full.astype(compute_dtype)


def _im2col(comb_nhwc, KH, KW, Kp, compute_dtype):
    """(B,H,W,C) -> (B*H*W, Kp) patches, lane-padded, ones-col for bias."""
    B, H, W, C = comb_nhwc.shape
    ph, pw = KH // 2, KW // 2
    comb_pad = jnp.pad(comb_nhwc, ((0, 0), (ph, ph), (pw, pw), (0, 0)))
    parts = [comb_pad[:, kh:kh + H, kw:kw + W, :]
             for kh in range(KH) for kw in range(KW)]
    patches = jnp.concatenate(parts, axis=-1).reshape(B * H * W, KH * KW * C)
    M, K = patches.shape
    cols = [patches, jnp.ones((M, 1), patches.dtype)]
    if Kp > K + 1:
        cols.append(jnp.zeros((M, Kp - K - 1), patches.dtype))
    return jnp.concatenate(cols, axis=-1).astype(compute_dtype)


def _pick_tiling(M):
    # ~128-row tiles: fill the MXU M dimension, keep the f32 activation slab
    # inside the vreg file, and give >=2 parallel tiles for v7x's two cores.
    for tm in (128, 256, 64, 32, 16, 8):
        if M % tm == 0:
            return M, tm
    return _round_up(M, 128), 128


def _convlstm_pallas(patches, w_mat, c_flat, Chid, TM):
    Mp, Kp = patches.shape
    kernel = partial(_convlstm_kernel, Chid=Chid)
    return pl.pallas_call(
        kernel,
        out_shape=jax.ShapeDtypeStruct((Mp, 2 * Chid), jnp.float32),
        grid=(Mp // TM,),
        in_specs=[
            pl.BlockSpec((TM, Kp), lambda m: (m, 0)),
            pl.BlockSpec((Kp, 4 * Chid), lambda m: (0, 0)),
            pl.BlockSpec((TM, Chid), lambda m: (m, 0)),
        ],
        out_specs=pl.BlockSpec((TM, 2 * Chid), lambda m: (m, 0)),
        compiler_params=pltpu.CompilerParams(
            dimension_semantics=("parallel",)),
    )(patches, w_mat, c_flat)


def conv_lstm_cell_prepared(x_nhwc, h_flat, c_flat, w_mat, kernel_size):
    """One ConvLSTM step in kernel-native layout.

    x_nhwc        : (B, H, W, Cin)
    h_flat, c_flat: (B*H*W, Chid) f32 recurrent state (row = (b, y, x))
    w_mat         : (Kp, 4*Chid) from prepare_conv_weights
    returns (h_flat_next, c_flat_next), each (B*H*W, Chid) f32
    """
    KH, KW = kernel_size
    B, H, W, _ = x_nhwc.shape
    Chid = w_mat.shape[1] // 4
    Kp = w_mat.shape[0]
    M = B * H * W

    comb = jnp.concatenate(
        [x_nhwc.astype(jnp.float32),
         h_flat.reshape(B, H, W, Chid).astype(jnp.float32)], axis=-1)
    patches = _im2col(comb, KH, KW, Kp, w_mat.dtype)
    c_in = c_flat.astype(jnp.float32)

    Mp, TM = _pick_tiling(M)
    if Mp != M:
        patches = jnp.pad(patches, ((0, Mp - M), (0, 0)))
        c_in = jnp.pad(c_in, ((0, Mp - M), (0, 0)))

    hc = _convlstm_pallas(patches, w_mat, c_in, Chid, TM)
    return hc[:M, :Chid], hc[:M, Chid:]


def conv_lstm_cell(x_nchw, weight, bias, state=None, kernel_size=(3, 3),
                   use_bf16=True):
    """PyTorch-compatible ConvLSTMCell forward (NCHW in / NCHW out).

    x_nchw : (B, Cin, H, W);  weight : (4*Chid, Cin+Chid, KH, KW) OIHW;
    bias : (4*Chid,);  state : optional (h, c) each (B, Chid, H, W).
    """
    B, Cin, H, W = x_nchw.shape
    Chid = weight.shape[0] // 4
    compute_dtype = jnp.bfloat16 if use_bf16 else jnp.float32

    # TODO(synk): for a T-step rollout, hoist prepare_conv_weights out of the
    # loop and keep (h, c) in the flat (B*H*W, Chid) layout between calls to
    # conv_lstm_cell_prepared; transpose to NCHW only at sequence boundaries.
    w_mat = prepare_conv_weights(weight, bias, compute_dtype)

    if state is None or state[0] is None or state[1] is None:
        h_flat = jnp.zeros((B * H * W, Chid), jnp.float32)
        c_flat = jnp.zeros((B * H * W, Chid), jnp.float32)
    else:
        h_cur, c_cur = state
        h_flat = jnp.transpose(h_cur, (0, 2, 3, 1)).reshape(B * H * W, Chid)
        c_flat = jnp.transpose(c_cur, (0, 2, 3, 1)).reshape(B * H * W, Chid)
        h_flat = h_flat.astype(jnp.float32)
        c_flat = c_flat.astype(jnp.float32)

    x_nhwc = jnp.transpose(x_nchw, (0, 2, 3, 1)).astype(jnp.float32)
    h_next, c_next = conv_lstm_cell_prepared(x_nhwc, h_flat, c_flat, w_mat,
                                             kernel_size)
    h_next = jnp.transpose(h_next.reshape(B, H, W, Chid), (0, 3, 1, 2))
    c_next = jnp.transpose(c_next.reshape(B, H, W, Chid), (0, 3, 1, 2))
    return h_next, c_next


# --------------------------------------------------------------------------
# Pure-JAX reference (mirrors the PyTorch module)
# --------------------------------------------------------------------------
def _reference_forward(x_nchw, weight, bias, state=None):
    B, Cin, H, W = x_nchw.shape
    Chid = weight.shape[0] // 4
    if state is None:
        h_cur = jnp.zeros((B, Chid, H, W), jnp.float32)
        c_cur = jnp.zeros((B, Chid, H, W), jnp.float32)
    else:
        h_cur, c_cur = state
    combined = jnp.concatenate([x_nchw, h_cur], axis=1)
    conv_out = lax.conv_general_dilated(
        combined.astype(jnp.float32), weight.astype(jnp.float32),
        window_strides=(1, 1), padding="SAME",
        dimension_numbers=("NCHW", "OIHW", "NCHW"))
    conv_out = conv_out + bias.reshape(1, -1, 1, 1)
    cc_i, cc_f, cc_g, cc_o = jnp.split(conv_out, 4, axis=1)
    i = jax.nn.sigmoid(cc_i)
    f = jax.nn.sigmoid(cc_f)
    g = jnp.tanh(cc_g)
    o = jax.nn.sigmoid(cc_o)
    c_next = f * c_cur + i * g
    h_next = o * jnp.tanh(c_next)
    return h_next, c_next


if __name__ == "__main__":
    B, Cin, Chid, H, W = 2, 4, 32, 16, 16
    KH, KW = 3, 3

    key = jax.random.PRNGKey(0)
    kx, kw_, kb = jax.random.split(key, 3)
    x = jax.random.normal(kx, (B, Cin, H, W), jnp.float32)
    weight = 0.05 * jax.random.normal(kw_, (4 * Chid, Cin + Chid, KH, KW),
                                      jnp.float32)
    bias = 0.05 * jax.random.normal(kb, (4 * Chid,), jnp.float32)

    # --- exact f32 path, two steps (exercises the c_cur path), tight tol ----
    h1, c1 = conv_lstm_cell(x, weight, bias, state=None, use_bf16=False)
    h2, c2 = conv_lstm_cell(x, weight, bias, state=(h1, c1), use_bf16=False)
    jax.block_until_ready((h2, c2))

    h1r, c1r = _reference_forward(x, weight, bias, None)
    h2r, c2r = _reference_forward(x, weight, bias, (h1r, c1r))

    assert h1.shape == (B, Chid, H, W) and c1.shape == (B, Chid, H, W)
    assert jnp.allclose(h1, h1r, atol=1e-4, rtol=1e-4)
    assert jnp.allclose(c1, c1r, atol=1e-4, rtol=1e-4)
    assert jnp.allclose(h2, h2r, atol=1e-4, rtol=1e-4)
    assert jnp.allclose(c2, c2r, atol=1e-4, rtol=1e-4)

    # --- bf16-operand / f32-accumulate path (MXU-friendly), relaxed tol -----
    hb, cb = conv_lstm_cell(x, weight, bias, state=None, use_bf16=True)
    jax.block_until_ready((hb, cb))
    assert jnp.allclose(hb, h1r, atol=5e-2, rtol=5e-2)
    assert jnp.allclose(cb, c1r, atol=5e-2, rtol=5e-2)

    print("KERNEL_OK")
</pallas_src>

<mosaic_0001>
module attributes {stable_mosaic.version = 11 : i64} {
  func.func @_convlstm_kernel(%arg0: i32, %arg1: memref<128x384xf32, #tpu.memory_space<vmem>>, %arg2: memref<384x128xf32, #tpu.memory_space<vmem>>, %arg3: memref<128x32xf32, #tpu.memory_space<vmem>>, %arg4: memref<128x64xf32, #tpu.memory_space<vmem>>) attributes {dimension_semantics = [#tpu.dimension_semantics<parallel>], iteration_bounds = array<i64: 4>, scalar_prefetch = 0 : i64, scratch_operands = 0 : i64, tpu.core_type = #tpu.core_type<tc>, window_params = [{transform_indices = @transform_0, window_bounds = array<i64: 128, 384>}, {pipeline_mode = #tpu.pipeline_mode<synchronous>, transform_indices = @transform_1, window_bounds = array<i64: 384, 128>}, {transform_indices = @transform_2, window_bounds = array<i64: 128, 32>}, {transform_indices = @transform_3, window_bounds = array<i64: 128, 64>}]} {
    %c0 = arith.constant 0 : index
    %c0_0 = arith.constant 0 : index
    %0 = vector.load %arg1[%c0, %c0_0] : memref<128x384xf32, #tpu.memory_space<vmem>>, vector<128x384xf32>
    %c0_1 = arith.constant 0 : index
    %c0_2 = arith.constant 0 : index
    %1 = vector.load %arg2[%c0_1, %c0_2] : memref<384x128xf32, #tpu.memory_space<vmem>>, vector<384x128xf32>
    %cst = arith.constant dense<0.000000e+00> : vector<128x128xf32>
    %2 = tpu.matmul %0, %1, %cst {dimension_numbers = #tpu.dot_dimension_numbers<[1], [0], [0], [1], [0, 0, 1, 1], [], []>} : vector<128x384xf32>, vector<384x128xf32>, vector<128x128xf32> -> vector<128x128xf32>
    %3 = tpu.iota {dimensions = array<i32: 1>} : vector<128x128xi32>
    %c64_i32 = arith.constant 64 : i32
    %4 = vector.broadcast %c64_i32 : i32 to vector<128x128xi32>
    %5 = arith.cmpi sge, %3, %4 : vector<128x128xi32>
    %c96_i32 = arith.constant 96 : i32
    %6 = vector.broadcast %c96_i32 : i32 to vector<128x128xi32>
    %7 = arith.cmpi slt, %3, %6 : vector<128x128xi32>
    %8 = arith.andi %5, %7 : vector<128x128xi1>
    %cst_3 = arith.constant 5.000000e-01 : f32
    %9 = vector.broadcast %cst_3 : f32 to vector<128x128xf32>
    %10 = arith.mulf %9, %2 : vector<128x128xf32>
    %11 = arith.select %8, %2, %10 : vector<128x128xi1>, vector<128x128xf32>
    %12 = math.tanh %11 : vector<128x128xf32>
    %cst_4 = arith.constant 5.000000e-01 : f32
    %13 = vector.broadcast %cst_4 : f32 to vector<128x128xf32>
    %14 = arith.mulf %13, %12 : vector<128x128xf32>
    %cst_5 = arith.constant 5.000000e-01 : f32
    %15 = vector.broadcast %cst_5 : f32 to vector<128x128xf32>
    %16 = arith.addf %14, %15 : vector<128x128xf32>
    %17 = arith.select %8, %12, %16 : vector<128x128xi1>, vector<128x128xf32>
    %18 = vector.extract_strided_slice %17 {offsets = [0, 0], sizes = [128, 32], strides = [1, 1]} : vector<128x128xf32> to vector<128x32xf32>
    %19 = vector.extract_strided_slice %17 {offsets = [0, 32], sizes = [128, 32], strides = [1, 1]} : vector<128x128xf32> to vector<128x32xf32>
    %20 = vector.extract_strided_slice %17 {offsets = [0, 64], sizes = [128, 32], strides = [1, 1]} : vector<128x128xf32> to vector<128x32xf32>
    %21 = vector.extract_strided_slice %17 {offsets = [0, 96], sizes = [128, 32], strides = [1, 1]} : vector<128x128xf32> to vector<128x32xf32>
    %c0_6 = arith.constant 0 : index
    %c0_7 = arith.constant 0 : index
    %22 = vector.load %arg3[%c0_6, %c0_7] : memref<128x32xf32, #tpu.memory_space<vmem>>, vector<128x32xf32>
    %23 = arith.mulf %19, %22 : vector<128x32xf32>
    %24 = arith.mulf %18, %20 : vector<128x32xf32>
    %25 = arith.addf %23, %24 : vector<128x32xf32>
    %26 = math.tanh %25 : vector<128x32xf32>
    %27 = arith.mulf %21, %26 : vector<128x32xf32>
    %28 = tpu.concatenate %27, %25 in 1 : vector<128x32xf32>, vector<128x32xf32> -> vector<128x64xf32>
    %c0_8 = arith.constant 0 : index
    %c0_9 = arith.constant 0 : index
    %29 = vector.load %arg4[%c0_8, %c0_9] : memref<128x64xf32, #tpu.memory_space<vmem>>, vector<128x64xf32>
    tpu.vector_store %arg4[%c0_8, %c0_9], %28 {strides = array<i32>} : memref<128x64xf32, #tpu.memory_space<vmem>>, vector<128x64xf32>,
    return
  }
  func.func @transform_0(%arg0: i32) -> (i32, i32) {
    %c0_i32 = arith.constant 0 : i32
    %c0_i32_0 = arith.constant 0 : i32
    return %arg0, %c0_i32 : i32, i32
  }
  func.func @transform_1(%arg0: i32) -> (i32, i32) {
    %c0_i32 = arith.constant 0 : i32
    %c0_i32_0 = arith.constant 0 : i32
    %c0_i32_1 = arith.constant 0 : i32
    return %c0_i32, %c0_i32_0 : i32, i32
  }
  func.func @transform_2(%arg0: i32) -> (i32, i32) {
    %c0_i32 = arith.constant 0 : i32
    %c0_i32_0 = arith.constant 0 : i32
    return %arg0, %c0_i32 : i32, i32
  }
  func.func @transform_3(%arg0: i32) -> (i32, i32) {
    %c0_i32 = arith.constant 0 : i32
    %c0_i32_0 = arith.constant 0 : i32
    return %arg0, %c0_i32 : i32, i32
  }
}

</mosaic_0001>

<bundles_post_ra>
// kernel: tpu_custom_call.1
= control target key start
LH: loop header
LB: loop body
LE: loop exit
PB: predicated region body
PF: predicated region fallthrough
CT: control target
= control target key end

     0   :  { %8 = vsyncpa [#allocation3], 0  ;;  %s2414_s0 = inlined_call_operand.hbm [shape: f32[512,384], index: 0, kind: input, shape index: {}]   ;;  %s2415_s1 = inlined_call_operand.vmem [shape: f32[384,128], index: 1, kind: input, shape index: {}]   ;;  %s2416_s2 = inlined_call_operand.vmem [shape: f32[512,32], index: 2, kind: input, shape index: {}]   ;;  %s2417_s3 = inlined_call_operand.vmem [shape: f32[512,64], index: 3, kind: output, shape index: {}]  }
   0x1   :  { %10 = vsyncpa [#allocation3 + $0x1], 0  ;;  %s1679_s12 = smov 0   ;;  %s1681_s13 = smov 0  }
   0x2   :  { %s1683_s14 = smov 0   ;;  %s1685_s15 = smov 0  }
   0x3 LB: > { %s1232_s16 = sadd.s32 4294967295, %s1652_s15   ;;  %s1699_s17 = sadd.s32 1, %s1652_s15   ;;  %s1652_s15 = sphi %s1685_s15, %s2426_s15   ;;  %s1648_s14 = sphi %s1683_s14, %s2425_s14   ;;  %s1644_s13 = sphi %s1681_s13, %s2424_s13   ;;  %s1640_s12 = sphi %s1679_s12, %s2423_s12  }
   0x4   : > { %s20_s18 = ssub.s32 %s1652_s15, %s1699_s17  ;;  %s23_s19 = sadd.s32 1, %s1648_s14 }
   0x5   : > { %p21_p0 = scmp.eq.s32.totalorder %s20_s18, 0  ;;  %p30_p1 = scmp.ne.s32.totalorder %s1648_s14, %s1644_s13 }
   0x6   : > { %p31_p2 = scmp.eq.s32.totalorder %s1652_s15, 0  ;;  %p36_p3 = scmp.ne.s32.totalorder %s1644_s13, %s1640_s12 }
   0x7   : > { %s1709_s20 = scalar_select %p21_p0, %s1648_s14, %s23_s19  }
   0x8   : > { %p32_p4 = por %p31_p2, %p30_p1  ;;  %p37_p5 = scmp.eq.s32.totalorder %s1232_s16, 0 }
   0x9   : > { %p1487_p6 = scmp.lt.s32.totalorder %s1652_s15, 4  ;;  %s136_s22 = sand.u32 1, %s1648_s14  }
   0xa   : > { %p1714_p7 = por %p37_p5, %p36_p3  ;;  %s1478_s23 = smul.u32 384, %s136_s22 }
   0xb   : > { %s1479_s24 = smul.u32 6144, %s1652_s15  ;;  %p1720_p8 = pnand %p1487_p6, %p32_p4 }
   0xc   : > { %s140_s29 = scalar_lea.vmem [#allocation2], %s1478_s23  ;;  %s1732_s4 = scalar_lea.sflag [#allocation3], %s136_s22 }
   0xd   : > { %s1727_s28 = scalar_lea.hbm %s2414_s0, %s1479_s24  ;;  %s148_s30 = sshll.u32 %s140_s29, 4  ;;  %s1729_s30 = int_to_ptr.vmem [resolvable:$true] %s148_s30 }
   0xe   : > { %s1588_s5 = scalar_lea.hbm %s1727_s28, 6144  ;;  %p1590_p11 = pneg %p1720_p8 }
   0xf   : > { %p1589_p10 = scmp.ne.s32.totalorder %s1727_s28, %s1588_s5  ;;  %s1593_s8 = scalar_lea.hbm %s2414_s0, 24576 }
  0x10   : > { %p1594_p0 = scmp.lt.u32.totalorder %s1727_s28, %s2414_s0  ;;  %p1595_p1 = scmp.lt.u32.totalorder %s1593_s8, %s1588_s5 }
  0x11   : > { %p1591_p12 = pnand %p1590_p11, %p1589_p10  ;;  %p1597_p3 = scmp.lt.u32.totalorder %s1588_s5, %s1727_s28 }
  0x12   : > { %p1596_p2 = por %p1595_p1, %p1594_p0 }
  0x13   : > { %p1592_p13 = pneg %p1591_p12 }
  0x14   : > { %p1598_p4 = por %p1597_p3, %p1596_p2 }
  0x16   : > { %p1599_p5 = pnand %p1598_p4, %p1592_p13 }
  0x18   : > { %1602 = shalt.err (!%p1599_p5)
}
  0x19   : > { %s1603_s11 = scalar_lea.vmem %s1729_s30, 6144  ;;  %s1654_s12 = smov [#allocation2]  }
  0x1a   : > { %p1604_p6 = scmp.ne.s32.totalorder %s1729_s30, %s1603_s11  ;;  %s1608_s18 = sshll.u32 %s1654_s12, 4  ;;  %s1609_s18 = int_to_ptr.vmem [resolvable:$false] %s1608_s18 }
  0x1b   : > { %s1610_s19 = scalar_lea.vmem %s1609_s18, 12288  ;;  %p1611_p9 = scmp.lt.s32.totalorder %s1729_s30, %s1609_s18 }
  0x1c   : > { %p1606_p10 = pnand %p1604_p6, %p1590_p11  ;;  %p1612_p0 = scmp.lt.s32.totalorder %s1610_s19, %s1603_s11 }
  0x1e   : > { %p1607_p12 = pneg %p1606_p10  ;;  %p1613_p1 = por %p1612_p0, %p1611_p9 }
  0x20   : > { %p1614_p2 = pnand %p1613_p1, %p1607_p12 }
  0x22   : > { %1617 = shalt.err (!%p1614_p2)
}
  0x23   : > { %s1655_s22 = smov 384   ;;  %s1656_s23 = smov 24  }
  0x24   : > { %1486 = dma.hbm_to_vmem [thread:$0]  (!%p1720_p8), %s1727_s28, 6144, %s1729_s30, %s1732_s4, %s1655_s22, %s1655_s22, %s1656_s23  }
  0x25   : > { %p165_p11 = scmp.lt.s32.totalorder %s1652_s15, 5  ;;  %p2420_p13 = scmp.ge.s32.totalorder %s1652_s15, 1 }
  0x27   : > { %p166_p3 = pnand %p2420_p13, %p165_p11 }
  0x28   : > { %s171_s24 = sand.u32 (!%p166_p3), 1, %s1644_s13  }
  0x29   : > { %169 = sbr.rel (%p166_p3) target bundleno = 859 (0x35b), region = 32  ;;  %s172_s27 = scalar_lea.sflag (!%p166_p3), [#allocation3], %s171_s24 }
  0x2a   : > { %s1480_s26 = smul.u32 (!%p166_p3), 384, %s171_s24 }
  0x2c   : > { %s1764_s29 = scalar_lea.vmem (!%p166_p3), [#allocation2], %s1480_s26 }
  0x30   : > { %1635 = dma.done.wait (%p1714_p7), %s172_s27, 6144  }
  0x31   : > { %1637 = vsyncadd (%p1714_p7), %s172_s27, 4294961152  ;;  %v280_v0 = vld [vmem:[%s2415_s1 + $0x80] sm:$0xff]  ;;  %v281_v1 = vld [vmem:[%s2415_s1 + $0x88] sm:$0xff]  ;;  %s1874_s9 = sshll.u32 %s1232_s16, 4  ;;  %s1657_s26 = smov 32   ;;  %vm1119_vm3 = vcmask 261120  }
  0x32   : > { %v264_v2 = vld [vmem:[%s2415_s1] sm:$0xff]  ;;  %v1414_v3 = vpack.c.bf16 %v281_v1, %v280_v0  ;;  %v265_v4 = vld [vmem:[%s2415_s1 + $0x8] sm:$0xff]  ;;  %v282_v9 = vld [vmem:[%s2415_s1 + $0x90] sm:$0xff]  ;;  %p205_p7 = scmp.lt.s32.totalorder %s1874_s9, 63  ;;  %vm1136_vm4 = vcmask 523264  }
  0x33   : > { %v296_v5 = vld [vmem:[%s2415_s1 + $0x100] sm:$0xff]  ;;  %v297_v6 = vld [vmem:[%s2415_s1 + $0x108] sm:$0xff]  ;;  %v1416_v7 = vpack.c.bf16 %v265_v4, %v264_v2  ;;  %v283_v10 = vld [vmem:[%s2415_s1 + $0x98] sm:$0xff] }
  0x34   : > { %v1446_v8 = vpack.c.bf16 %v297_v6, %v296_v5  ;;  %v266_v11 = vld [vmem:[%s2415_s1 + $0x10] sm:$0xff]  ;;  %1415 = vmatprep.subr.bf16.mxu0 %v1414_v3  ;;  %v1418_v12 = vpack.c.bf16 %v283_v10, %v282_v9  ;;  %v267_v13 = vld [vmem:[%s2415_s1 + $0x18] sm:$0xff]  ;;  %v284_v18 = vld [vmem:[%s2415_s1 + $0xa0] sm:$0xff]  ;;  %s2428_s9 = smov (!%p205_p7, %s1874_s9), 63 }
  0x35   : > { %v298_v14 = vld [vmem:[%s2415_s1 + $0x110] sm:$0xff]  ;;  %v299_v15 = vld [vmem:[%s2415_s1 + $0x118] sm:$0xff]  ;;  %1417 = vmatpush3.bf16.msra.mxu0 %v1416_v7  ;;  %v1420_v16 = vpack.c.bf16 %v267_v13, %v266_v11  ;;  %v285_v19 = vld [vmem:[%s2415_s1 + $0xa8] sm:$0xff]  ;;  %s1241_s19 = sshll.u32 %s2428_s9, 3 }
  0x36   : > { %1447 = vmatprep.subr.bf16.mxu1 %v1446_v8  ;;  %v1450_v17 = vpack.c.bf16 %v299_v15, %v298_v14  ;;  %v268_v20 = vld [vmem:[%s2415_s1 + $0x20] sm:$0xff]  ;;  %1419 = vmatprep.subr.bf16.mxu0 %v1418_v12  ;;  %v1422_v21 = vpack.c.bf16 %v285_v19, %v284_v18  ;;  %v269_v22 = vld [vmem:[%s2415_s1 + $0x28] sm:$0xff]  ;;  %v286_v26 = vld [vmem:[%s2415_s1 + $0xb0] sm:$0xff]  ;;  %s1932_s24 = scalar_lea.vmem %s2416_s2, %s1241_s19  ;;  %s2335_s6 = scalar_lea.vmem %s2417_s3, %s1241_s19 }
  0x37   : > { %1449 = vmatpush3.bf16.msra.mxu1 %v1446_v8  ;;  %v300_v23 = vld [vmem:[%s2415_s1 + $0x120] sm:$0xff]  ;;  %v301_v24 = vld [vmem:[%s2415_s1 + $0x128] sm:$0xff]  ;;  %v287_v27 = vld [vmem:[%s2415_s1 + $0xb8] sm:$0xff]  ;;  %v1424_v30 = vpack.c.bf16 %v269_v22, %v268_v20 }
  0x38   : > { %1451 = vmatprep.subr.bf16.mxu1 %v1450_v17  ;;  %v1454_v25 = vpack.c.bf16 %v301_v24, %v300_v23  ;;  %v302_v28 = vld [vmem:[%s2415_s1 + $0x130] sm:$0xff]  ;;  %v303_v29 = vld [vmem:[%s2415_s1 + $0x138] sm:$0xff]  ;;  %v1426_v31 = vpack.c.bf16 %v287_v27, %v286_v26  ;;  %v288_v35 = vld [vmem:[%s2415_s1 + $0xc0] sm:$0xff] }
  0x39   : > { %1421 = vmatpush3.bf16.msra.mxu0 %v1420_v16  ;;  %v270_v32 = vld [vmem:[%s2415_s1 + $0x30] sm:$0xff]  ;;  %v271_v33 = vld [vmem:[%s2415_s1 + $0x38] sm:$0xff]  ;;  %v1458_v34 = vpack.c.bf16 %v303_v29, %v302_v28  ;;  %v289_v36 = vld [vmem:[%s2415_s1 + $0xc8] sm:$0xff] }
  0x3a   : > { %1423 = vmatprep.subr.bf16.mxu0 %v1422_v21  ;;  %v304_v37 = vld [vmem:[%s2415_s1 + $0x140] sm:$0xff]  ;;  %v305_v38 = vld [vmem:[%s2415_s1 + $0x148] sm:$0xff]  ;;  %v1428_v39 = vpack.c.bf16 %v271_v33, %v270_v32  ;;  %v1430_v40 = vpack.c.bf16 %v289_v36, %v288_v35  ;;  %v290_v44 = vld [vmem:[%s2415_s1 + $0xd0] sm:$0xff] }
  0x3b   : > { %1453 = vmatpush3.bf16.msra.mxu1 %v1450_v17  ;;  %v272_v41 = vld [vmem:[%s2415_s1 + $0x40] sm:$0xff]  ;;  %v273_v42 = vld [vmem:[%s2415_s1 + $0x48] sm:$0xff]  ;;  %v1462_v43 = vpack.c.bf16 %v305_v38, %v304_v37  ;;  %v291_v45 = vld [vmem:[%s2415_s1 + $0xd8] sm:$0xff] }
  0x3c   : > { %1455 = vmatprep.subr.bf16.mxu1 %v1454_v25  ;;  %v306_v46 = vld [vmem:[%s2415_s1 + $0x150] sm:$0xff]  ;;  %v307_v47 = vld [vmem:[%s2415_s1 + $0x158] sm:$0xff]  ;;  %v1432_v48 = vpack.c.bf16 %v273_v42, %v272_v41  ;;  %v217_v49 = vld [vmem:[%s1764_s29 + $0x8] sm:$0xff]  ;;  %v1434_v51 = vpack.c.bf16 %v291_v45, %v290_v44 }
  0x3d   : > { %1425 = vmatpush3.bf16.msra.mxu0 %v1424_v30  ;;  %v218_v50 = vld [vmem:[%s1764_s29 + $0x10] sm:$0xff]  ;;  %v275_v53 = vld [vmem:[%s2415_s1 + $0x58] sm:$0xff]  ;;  %v1466_v54 = vpack.c.bf16 %v307_v47, %v306_v46  ;;  %v292_v55 = vld [vmem:[%s2415_s1 + $0xe0] sm:$0xff]  ;;  %376 = vmatprep.mubr.f32.mxu0 %v217_v49 }
  0x3e   : > { %1427 = vmatprep.subr.bf16.mxu0 %v1426_v31  ;;  %v274_v52 = vld [vmem:[%s2415_s1 + $0x50] sm:$0xff]  ;;  %v293_v56 = vld [vmem:[%s2415_s1 + $0xe8] sm:$0xff]  ;;  %v308_v57 = vld [vmem:[%s2415_s1 + $0x160] sm:$0xff]  ;;  %1390 = vmatprep.mubr.f32.mxu1 %v218_v50 }
  0x3f   : > { %1457 = vmatpush3.bf16.msra.mxu1 %v1454_v25  ;;  %v309_v58 = vld [vmem:[%s2415_s1 + $0x168] sm:$0xff]  ;;  %v1436_v59 = vpack.c.bf16 %v275_v53, %v274_v52  ;;  %v1438_v60 = vpack.c.bf16 %v293_v56, %v292_v55  ;;  %v276_v61 = vld [vmem:[%s2415_s1 + $0x60] sm:$0xff]  ;;  %v294_v0 = vld [vmem:[%s2415_s1 + $0xf0] sm:$0xff] }
  0x40   : > { %1459 = vmatprep.subr.bf16.mxu1 %v1458_v34  ;;  %v277_v62 = vld [vmem:[%s2415_s1 + $0x68] sm:$0xff]  ;;  %v1470_v63 = vpack.c.bf16 %v309_v58, %v308_v57  ;;  %v295_v1 = vld [vmem:[%s2415_s1 + $0xf8] sm:$0xff]  ;;  %v310_v2 = vld [vmem:[%s2415_s1 + $0x170] sm:$0xff]  ;;  %v602_v58 = vlaneseq }
  0x41   : > { %1429 = vmatpush3.bf16.msra.mxu0 %v1428_v39  ;;  %v311_v3 = vld [vmem:[%s2415_s1 + $0x178] sm:$0xff]  ;;  %v1440_v4 = vpack.c.bf16 %v277_v62, %v276_v61  ;;  %v1442_v5 = vpack.c.bf16 %v295_v1, %v294_v0  ;;  %v278_v6 = vld [vmem:[%s2415_s1 + $0x70] sm:$0xff]  ;;  %v216_v10 = vld [vmem:[%s1764_s29] sm:$0xff] }
  0x42   : > { %1431 = vmatprep.subr.bf16.mxu0 %v1430_v40  ;;  %v279_v7 = vld [vmem:[%s2415_s1 + $0x78] sm:$0xff]  ;;  %v1474_v8 = vpack.c.bf16 %v311_v3, %v310_v2  ;;  %v703_v11 = vld [vmem:[%s1932_s24] sm:$0xff]  ;;  %v704_v12 = vld [vmem:[%s1932_s24 + $0x8] sm:$0xff] }
  0x43   : > { %1461 = vmatpush3.bf16.msra.mxu1 %v1458_v34  ;;  %v1444_v9 = vpack.c.bf16 %v279_v7, %v278_v6  ;;  %v221_v13 = vld [vmem:[%s1764_s29 + $0x28] sm:$0xff]  ;;  %v220_v14 = vld [vmem:[%s1764_s29 + $0x20] sm:$0xff]  ;;  %735 = vrot.lane.b32.xlu0 %v703_v11, %s1657_s26  ;;  %v219_v16 = vld [vmem:[%s1764_s29 + $0x18] sm:$0xff] }
  0x44   : > { %1463 = vmatprep.subr.bf16.mxu1 %v1462_v43  ;;  %v224_v15 = vld [vmem:[%s1764_s29 + $0x40] sm:$0xff]  ;;  %737 = vrot.lane.b32.xlu1 %v704_v12, %s1657_s26  ;;  %v223_v17 = vld [vmem:[%s1764_s29 + $0x38] sm:$0xff]  ;;  %v230_v19 = vld [vmem:[%s1764_s29 + $0x70] sm:$0xff] }
  0x45   : > { %1433 = vmatpush3.bf16.msra.mxu0 %v1432_v48  ;;  %v227_v18 = vld [vmem:[%s1764_s29 + $0x58] sm:$0xff]  ;;  %v222_v20 = vld [vmem:[%s1764_s29 + $0x30] sm:$0xff]  ;;  %v233_v22 = vld [vmem:[%s1764_s29 + $0x88] sm:$0xff] }
  0x46   : > { %1435 = vmatprep.subr.bf16.mxu0 %v1434_v51  ;;  %v226_v21 = vld [vmem:[%s1764_s29 + $0x50] sm:$0xff]  ;;  %v236_v23 = vld [vmem:[%s1764_s29 + $0xa0] sm:$0xff]  ;;  %v225_v24 = vld [vmem:[%s1764_s29 + $0x48] sm:$0xff] }
  0x47   : > { %1465 = vmatpush3.bf16.msra.mxu1 %v1462_v43  ;;  %v229_v25 = vld [vmem:[%s1764_s29 + $0x68] sm:$0xff]  ;;  %v239_v26 = vld [vmem:[%s1764_s29 + $0xb8] sm:$0xff]  ;;  %v242_v27 = vld [vmem:[%s1764_s29 + $0xd0] sm:$0xff] }
  0x48   : > { %1467 = vmatprep.subr.bf16.mxu1 %v1466_v54  ;;  %v228_v28 = vld [vmem:[%s1764_s29 + $0x60] sm:$0xff]  ;;  %v245_v30 = vld [vmem:[%s1764_s29 + $0xe8] sm:$0xff]  ;;  %v231_v32 = vld [vmem:[%s1764_s29 + $0x78] sm:$0xff] }
  0x49   : > { %1437 = vmatpush3.bf16.msra.mxu0 %v1436_v59  ;;  %v232_v29 = vld [vmem:[%s1764_s29 + $0x80] sm:$0xff]  ;;  %v235_v33 = vld [vmem:[%s1764_s29 + $0x98] sm:$0xff]  ;;  %v254_v35 = vld [vmem:[%s1764_s29 + $0x130] sm:$0xff]  ;;  %v603_v59 = vand.u32 127, %v602_v58 }
  0x4a   : > { %1439 = vmatprep.subr.bf16.mxu0 %v1438_v60  ;;  %v248_v31 = vld [vmem:[%s1764_s29 + $0x100] sm:$0xff]  ;;  %v251_v34 = vld [vmem:[%s1764_s29 + $0x118] sm:$0xff]  ;;  %v234_v36 = vld [vmem:[%s1764_s29 + $0x90] sm:$0xff] }
  0x4b   : > { %1469 = vmatpush3.bf16.msra.mxu1 %v1466_v54  ;;  %v238_v37 = vld [vmem:[%s1764_s29 + $0xb0] sm:$0xff]  ;;  %v257_v38 = vld [vmem:[%s1764_s29 + $0x148] sm:$0xff]  ;;  %v260_v39 = vld [vmem:[%s1764_s29 + $0x160] sm:$0xff]  ;;  %vm604_vm0 = vcmp.ge.s32.totalorder %v603_v59, 64  ;;  %vm605_vm1 = vcmp.lt.s32.totalorder %v603_v59, 96 }
  0x4c   : > { %1471 = vmatprep.subr.bf16.mxu1 %v1470_v63  ;;  %v237_v40 = vld [vmem:[%s1764_s29 + $0xa8] sm:$0xff]  ;;  %v263_v42 = vld [vmem:[%s1764_s29 + $0x178] sm:$0xff]  ;;  %v240_v43 = vld [vmem:[%s1764_s29 + $0xc0] sm:$0xff] }
  0x4d   : > { %1441 = vmatpush3.bf16.msra.mxu0 %v1440_v4  ;;  %v241_v41 = vld [vmem:[%s1764_s29 + $0xc8] sm:$0xff]  ;;  %v244_v44 = vld [vmem:[%s1764_s29 + $0xe0] sm:$0xff]  ;;  %v243_v45 = vld [vmem:[%s1764_s29 + $0xd8] sm:$0xff] }
  0x4e   : > { %1443 = vmatprep.subr.bf16.mxu0 %v1442_v5  ;;  %v247_v46 = vld [vmem:[%s1764_s29 + $0xf8] sm:$0xff]  ;;  %v246_v47 = vld [vmem:[%s1764_s29 + $0xf0] sm:$0xff]  ;;  %v249_v49 = vld [vmem:[%s1764_s29 + $0x108] sm:$0xff] }
  0x4f   : > { %1473 = vmatpush3.bf16.msra.mxu1 %v1470_v63  ;;  %v250_v48 = vld [vmem:[%s1764_s29 + $0x110] sm:$0xff]  ;;  %v253_v50 = vld [vmem:[%s1764_s29 + $0x128] sm:$0xff]  ;;  %v252_v51 = vld [vmem:[%s1764_s29 + $0x120] sm:$0xff] }
  0x50   : > { %1475 = vmatprep.subr.bf16.mxu1 %v1474_v8  ;;  %v256_v52 = vld [vmem:[%s1764_s29 + $0x140] sm:$0xff]  ;;  %v255_v53 = vld [vmem:[%s1764_s29 + $0x138] sm:$0xff]  ;;  %v258_v55 = vld [vmem:[%s1764_s29 + $0x150] sm:$0xff] }
  0x51   : > { %1445 = vmatpush3.bf16.msra.mxu0 %v1444_v9  ;;  %v259_v54 = vld [vmem:[%s1764_s29 + $0x158] sm:$0xff]  ;;  %v262_v56 = vld [vmem:[%s1764_s29 + $0x170] sm:$0xff]  ;;  %v261_v57 = vld [vmem:[%s1764_s29 + $0x168] sm:$0xff]  ;;  %s1658_s29 = smov 64  }
  0x52   : > { %vm1984_vm2 = vmand %vm604_vm0, %vm605_vm1  ;;  %v709_v3 = vld [vmem:[%s1932_s24 + $0x30] sm:$0xff] }
  0x53   : > { %1477 = vmatpush3.bf16.msra.mxu1 %v1474_v8 }
  0x54   : > { %377 = vmatmul.mubr.f32.vlgmr.msra.gmra.mrb[0].mxu0 %v216_v10 }
  0x55   : > { %381 = vmatprep.mubr.f32.mxu0 %v220_v14 }
  0x56   : > { %1391 = vmatmul.mubr.f32.vlgmr.msra.gmra.mrb[0].mxu1 %v221_v13 }
  0x57   : > { %1393 = vmatprep.mubr.f32.mxu1 %v224_v15 }
  0x58   : > { %382 = vmatmul.mubr.f32.gmra.mrb[2].mxu0 %v219_v16 }
  0x59   : > { %386 = vmatprep.mubr.f32.mxu0 %v223_v17 }
  0x5a   : > { %1394 = vmatmul.mubr.f32.gmra.mrb[2].mxu1 %v227_v18 }
  0x5b   : > { %1396 = vmatprep.mubr.f32.mxu1 %v230_v19 }
  0x5c   : > { %387 = vmatmul.mubr.f32.gmra.mrb[4].mxu0 %v222_v20 }
  0x5d   : > { %391 = vmatprep.mubr.f32.mxu0 %v226_v21 }
  0x5e   : > { %1397 = vmatmul.mubr.f32.gmra.mrb[4].mxu1 %v233_v22 }
  0x5f   : > { %1399 = vmatprep.mubr.f32.mxu1 %v236_v23 }
  0x60   : > { %392 = vmatmul.mubr.f32.gmra.mrb[6].mxu0 %v225_v24 }
  0x61   : > { %396 = vmatprep.mubr.f32.mxu0 %v229_v25 }
  0x62   : > { %1400 = vmatmul.mubr.f32.gmra.mrb[6].mxu1 %v239_v26 }
  0x63   : > { %1402 = vmatprep.mubr.f32.mxu1 %v242_v27 }
  0x64   : > { %397 = vmatmul.mubr.f32.gmra.mrb[8].mxu0 %v228_v28 }
  0x65   : > { %401 = vmatprep.mubr.f32.mxu0 %v232_v29 }
  0x66   : > { %1403 = vmatmul.mubr.f32.gmra.mrb[8].mxu1 %v245_v30 }
  0x67   : > { %1405 = vmatprep.mubr.f32.mxu1 %v248_v31 }
  0x68   : > { %402 = vmatmul.mubr.f32.gmra.mrb[10].mxu0 %v231_v32 }
  0x69   : > { %406 = vmatprep.mubr.f32.mxu0 %v235_v33 }
  0x6a   : > { %1406 = vmatmul.mubr.f32.gmra.mrb[10].mxu1 %v251_v34 }
  0x6b   : > { %1408 = vmatprep.mubr.f32.mxu1 %v254_v35 }
  0x6c   : > { %407 = vmatmul.mubr.f32.gmra.mrb[12].mxu0 %v234_v36 }
  0x6d   : > { %411 = vmatprep.mubr.f32.mxu0 %v238_v37 }
  0x6e   : > { %1409 = vmatmul.mubr.f32.gmra.mrb[12].mxu1 %v257_v38 }
  0x6f   : > { %1411 = vmatprep.mubr.f32.mxu1 %v260_v39 }
  0x70   : > { %412 = vmatmul.mubr.f32.gmra.mrb[14].mxu0 %v237_v40 }
  0x71   : > { %416 = vmatprep.mubr.f32.mxu0 %v241_v41 }
  0x72   : > { %1412 = vmatmul.mubr.f32.gmra.mrb[14].mxu1 %v263_v42 }
  0x74   : > { %417 = vmatmul.mubr.f32.gmra.mrb[16].mxu0 %v240_v43 }
  0x75   : > { %421 = vmatprep.mubr.f32.mxu0 %v244_v44 }
  0x78   : > { %422 = vmatmul.mubr.f32.gmra.mrb[18].mxu0 %v243_v45 }
  0x79   : > { %426 = vmatprep.mubr.f32.mxu0 %v247_v46 }
  0x7c   : > { %427 = vmatmul.mubr.f32.gmra.mrb[20].mxu0 %v246_v47 }
  0x7d   : > { %431 = vmatprep.mubr.f32.mxu0 %v250_v48 }
  0x80   : > { %432 = vmatmul.mubr.f32.gmra.mrb[22].mxu0 %v249_v49 }
  0x81   : > { %436 = vmatprep.mubr.f32.mxu0 %v253_v50 }
  0x84   : > { %437 = vmatmul.mubr.f32.gmra.mrb[24].mxu0 %v252_v51 }
  0x85   : > { %441 = vmatprep.mubr.f32.mxu0 %v256_v52 }
  0x88   : > { %442 = vmatmul.mubr.f32.gmra.mrb[26].mxu0 %v255_v53 }
  0x89   : > { %446 = vmatprep.mubr.f32.mxu0 %v259_v54 }
  0x8c   : > { %447 = vmatmul.mubr.f32.gmra.mrb[28].mxu0 %v258_v55 }
  0x8d   : > { %451 = vmatprep.mubr.f32.mxu0 %v262_v56 }
  0x90   : > { %452 = vmatmul.mubr.f32.gmra.mrb[30].mxu0 %v261_v57 }
 0x127   : > { %v1278_v60 = vpop.f32.mrb[0].mxu0 }
 0x128   : > { %v1279_v61 = vpop.f32.mrb[1].mxu0 }
 0x129   : > { %v1392_v62 = vpop.f32.mrb[0].mxu1  ;;  %v1280_v63 = vadd.f32 %v1279_v61, %v1278_v60 }
 0x12a   : > { %v523_v0 = vpop.f32.mrb[1].mxu1 }
 0x12b   : > { %v524_v1 = vadd.f32 %v1280_v63, %v523_v0  ;;  %v1281_v2 = vpop.f32.mrb[2].mxu0 }
 0x12c   : > { %v1282_v4 = vpop.f32.mrb[3].mxu0 }
 0x12d   : > { %v1395_v5 = vpop.f32.mrb[2].mxu1  ;;  %v607_v6 = vmul.f32 0.5, %v524_v1  ;;  %v1283_v7 = vadd.f32 %v1282_v4, %v1281_v2 }
 0x12e   : > { %v533_v8 = vpop.f32.mrb[3].mxu1 }
 0x12f   : > { %v623_v9 = vsel %vm1984_vm2, %v524_v1, %v607_v6  ;;  %v529_v10 = vadd.f32 %v1392_v62, %v1283_v7  ;;  %v1284_v11 = vpop.f32.mrb[4].mxu0 }
 0x130   : > { %1524 = vtanh.f32 %v623_v9  ;;  %v1285_v12 = vpop.f32.mrb[5].mxu0 }
 0x131   : > { %v1398_v13 = vpop.f32.mrb[4].mxu1  ;;  %v608_v14 = vmul.f32 0.5, %v529_v10  ;;  %v1286_v15 = vadd.f32 %v1285_v12, %v1284_v11 }
 0x132   : > { %v543_v16 = vpop.f32.mrb[5].mxu1 }
 0x133   : > { %v624_v17 = vsel %vm1984_vm2, %v529_v10, %v608_v14  ;;  %v534_v18 = vadd.f32 %v1286_v15, %v533_v8  ;;  %v1287_v19 = vpop.f32.mrb[6].mxu0 }
 0x134   : > { %1526 = vtanh.f32 %v624_v17  ;;  %v1288_v20 = vpop.f32.mrb[7].mxu0 }
 0x135   : > { %v1401_v21 = vpop.f32.mrb[6].mxu1  ;;  %v609_v22 = vmul.f32 0.5, %v534_v18  ;;  %v1289_v23 = vadd.f32 %v1288_v20, %v1287_v19 }
 0x136   : > { %v553_v24 = vpop.f32.mrb[7].mxu1 }
 0x137   : > { %v625_v25 = vsel %vm1984_vm2, %v534_v18, %v609_v22  ;;  %v539_v26 = vadd.f32 %v1395_v5, %v1289_v23  ;;  %v1290_v27 = vpop.f32.mrb[8].mxu0 }
 0x138   : > { %1528 = vtanh.f32 %v625_v25  ;;  %v1291_v28 = vpop.f32.mrb[9].mxu0 }
 0x139   : > { %v1994_v29 = vpop.f32.mrb[8].mxu1  ;;  %v610_v30 = vmul.f32 0.5, %v539_v26  ;;  %v1292_v31 = vadd.f32 %v1291_v28, %v1290_v27 }
 0x13a   : > { %v563_v32 = vpop.f32.mrb[9].mxu1  ;;  %v1525_v33 = vpop.eup %1524 }
 0x13b   : > { %v626_v34 = vsel %vm1984_vm2, %v539_v26, %v610_v30  ;;  %v544_v35 = vadd.f32 %v1292_v31, %v543_v16  ;;  %v1293_v36 = vpop.f32.mrb[10].mxu0  ;;  %v655_v37 = vmul.f32 0.5, %v1525_v33 }
 0x13c   : > { %1530 = vtanh.f32 %v626_v34  ;;  %v1294_v38 = vpop.f32.mrb[11].mxu0 }
 0x13d   : > { %v1998_v39 = vpop.f32.mrb[10].mxu1  ;;  %v611_v40 = vmul.f32 0.5, %v544_v35  ;;  %v1295_v41 = vadd.f32 %v1294_v38, %v1293_v36  ;;  %v671_v42 = vadd.f32 0.5, %v655_v37 }
 0x13e   : > { %v2000_v43 = vpop.f32.mrb[11].mxu1  ;;  %v1527_v44 = vpop.eup %1526 }
 0x13f   : > { %v627_v45 = vsel %vm1984_vm2, %v544_v35, %v611_v40  ;;  %v549_v46 = vadd.f32 %v1398_v13, %v1295_v41  ;;  %v2006_v47 = vsel %vm1984_vm2, %v1525_v33, %v671_v42  ;;  %v1296_v48 = vpop.f32.mrb[12].mxu0  ;;  %v656_v49 = vmul.f32 0.5, %v1527_v44 }
 0x140   : > { %1532 = vtanh.f32 %v627_v45  ;;  %v1297_v50 = vpop.f32.mrb[13].mxu0  ;;  %815 = vrot.lane.b32.xlu0 %v2006_v47, %s1658_s29 }
 0x141   : > { %v2010_v51 = vpop.f32.mrb[12].mxu1  ;;  %v612_v52 = vmul.f32 0.5, %v549_v46  ;;  %v1298_v53 = vadd.f32 %v1297_v50, %v1296_v48  ;;  %v672_v54 = vadd.f32 0.5, %v656_v49 }
 0x142   : > { %v2012_v55 = vpop.f32.mrb[13].mxu1  ;;  %v1529_v56 = vpop.eup %1528 }
 0x143   : > { %v628_v57 = vsel %vm1984_vm2, %v549_v46, %v612_v52  ;;  %v554_v58 = vadd.f32 %v1298_v53, %v553_v24  ;;  %v2018_v59 = vsel %vm1984_vm2, %v1527_v44, %v672_v54  ;;  %v1299_v60 = vpop.f32.mrb[14].mxu0  ;;  %v657_v61 = vmul.f32 0.5, %v1529_v56 }
 0x144   : > { %1534 = vtanh.f32 %v628_v57  ;;  %v1300_v62 = vpop.f32.mrb[15].mxu0  ;;  %817 = vrot.lane.b32.xlu0 %v2018_v59, %s1658_s29 }
 0x145   : > { %v2022_v63 = vpop.f32.mrb[14].mxu1  ;;  %v613_v0 = vmul.f32 0.5, %v554_v58  ;;  %v1301_v1 = vadd.f32 %v1300_v62, %v1299_v60  ;;  %v673_v2 = vadd.f32 0.5, %v657_v61 }
 0x146   : > { %v2024_v4 = vpop.f32.mrb[15].mxu1  ;;  %v1531_v5 = vpop.eup %1530 }
 0x147   : > { %v629_v6 = vsel %vm1984_vm2, %v554_v58, %v613_v0  ;;  %v559_v7 = vadd.f32 %v1401_v21, %v1301_v1  ;;  %v1302_v8 = vpop.f32.mrb[16].mxu0  ;;  %v2030_v9 = vsel %vm1984_vm2, %v1529_v56, %v673_v2  ;;  %v658_v10 = vmul.f32 0.5, %v1531_v5 }
 0x148   : > { %1536 = vtanh.f32 %v629_v6  ;;  %v1303_v11 = vpop.f32.mrb[17].mxu0  ;;  %819 = vrot.lane.b32.xlu1 %v2030_v9, %s1658_s29 }
 0x149   : > { %v614_v12 = vmul.f32 0.5, %v559_v7  ;;  %v1304_v13 = vadd.f32 %v1303_v11, %v1302_v8  ;;  %v674_v14 = vadd.f32 0.5, %v658_v10 }
 0x14a   : > { %v1533_v15 = vpop.eup %1532 }
 0x14b   : > { %v630_v16 = vsel %vm1984_vm2, %v559_v7, %v614_v12  ;;  %v564_v17 = vadd.f32 %v1304_v13, %v563_v32  ;;  %v1305_v18 = vpop.f32.mrb[18].mxu0  ;;  %v2038_v19 = vsel %vm1984_vm2, %v1531_v5, %v674_v14  ;;  %v659_v20 = vmul.f32 0.5, %v1533_v15 }
 0x14c   : > { %1538 = vtanh.f32 %v630_v16  ;;  %v1306_v21 = vpop.f32.mrb[19].mxu0  ;;  %821 = vrot.lane.b32.xlu1 %v2038_v19, %s1658_s29 }
 0x14d   : > { %v615_v22 = vmul.f32 0.5, %v564_v17  ;;  %v1307_v23 = vadd.f32 %v1306_v21, %v1305_v18  ;;  %v675_v24 = vadd.f32 0.5, %v659_v20 }
 0x14e   : > { %v1535_v25 = vpop.eup %1534 }
 0x14f   : > { %v631_v26 = vsel %vm1984_vm2, %v564_v17, %v615_v22  ;;  %v569_v27 = vadd.f32 %v1994_v29, %v1307_v23  ;;  %v1308_v28 = vpop.f32.mrb[20].mxu0  ;;  %v2047_v30 = vsel %vm1984_vm2, %v1533_v15, %v675_v24  ;;  %v660_v31 = vmul.f32 0.5, %v1535_v25 }
 0x150   : > { %1540 = vtanh.f32 %v631_v26  ;;  %v1309_v32 = vpop.f32.mrb[21].mxu0  ;;  %823 = vrot.lane.b32.xlu0 %v2047_v30, %s1658_s29 }
 0x151   : > { %v616_v33 = vmul.f32 0.5, %v569_v27  ;;  %v1310_v34 = vadd.f32 %v1309_v32, %v1308_v28  ;;  %v676_v35 = vadd.f32 0.5, %v660_v31 }
 0x152   : > { %v1537_v36 = vpop.eup %1536 }
 0x153   : > { %v632_v37 = vsel %vm1984_vm2, %v569_v27, %v616_v33  ;;  %v574_v29 = vadd.f32 %v1310_v34, %v2000_v43  ;;  %v1311_v38 = vpop.f32.mrb[22].mxu0  ;;  %v2056_v40 = vsel %vm1984_vm2, %v1535_v25, %v676_v35  ;;  %v661_v41 = vmul.f32 0.5, %v1537_v36 }
 0x154   : > { %1542 = vtanh.f32 %v632_v37  ;;  %v1312_v42 = vpop.f32.mrb[23].mxu0  ;;  %825 = vrot.lane.b32.xlu1 %v2056_v40, %s1658_s29 }
 0x155   : > { %v617_v44 = vmul.f32 0.5, %v574_v29  ;;  %v1313_v45 = vadd.f32 %v1312_v42, %v1311_v38  ;;  %v677_v46 = vadd.f32 0.5, %v661_v41 }
 0x156   : > { %v1539_v48 = vpop.eup %1538 }
 0x157   : > { %v633_v49 = vsel %vm1984_vm2, %v574_v29, %v617_v44  ;;  %v579_v43 = vadd.f32 %v1998_v39, %v1313_v45  ;;  %v1314_v50 = vpop.f32.mrb[24].mxu0  ;;  %v2065_v52 = vsel %vm1984_vm2, %v1537_v36, %v677_v46  ;;  %v662_v53 = vmul.f32 0.5, %v1539_v48 }
 0x158   : > { %1544 = vtanh.f32 %v633_v49  ;;  %v1315_v54 = vpop.f32.mrb[25].mxu0  ;;  %827 = vrot.lane.b32.xlu0 %v2065_v52, %s1658_s29 }
 0x159   : > { %v618_v56 = vmul.f32 0.5, %v579_v43  ;;  %v1316_v57 = vadd.f32 %v1315_v54, %v1314_v50  ;;  %v678_v58 = vadd.f32 0.5, %v662_v53 }
 0x15a   : > { %v1541_v60 = vpop.eup %1540 }
 0x15b   : > { %v634_v61 = vsel %vm1984_vm2, %v579_v43, %v618_v56  ;;  %v584_v39 = vadd.f32 %v1316_v57, %v2012_v55  ;;  %v1317_v62 = vpop.f32.mrb[26].mxu0  ;;  %v2074_v0 = vsel %vm1984_vm2, %v1539_v48, %v678_v58  ;;  %v663_v1 = vmul.f32 0.5, %v1541_v60  ;;  %v705_v57 = vld [vmem:[%s1932_s24 + $0x10] sm:$0xff] }
 0x15c   : > { %1546 = vtanh.f32 %v634_v61  ;;  %v1318_v2 = vpop.f32.mrb[27].mxu0  ;;  %829 = vrot.lane.b32.xlu1 %v2074_v0, %s1658_s29  ;;  %v707_v61 = vld [vmem:[%s1932_s24 + $0x20] sm:$0xff] }
 0x15d   : > { %v619_v5 = vmul.f32 0.5, %v584_v39  ;;  %v1319_v6 = vadd.f32 %v1318_v2, %v1317_v62  ;;  %v679_v7 = vadd.f32 0.5, %v663_v1  ;;  %v710_v62 = vld [vmem:[%s1932_s24 + $0x38] sm:$0xff]  ;;  %v711_v1 = vld [vmem:[%s1932_s24 + $0x40] sm:$0xff]  ;;  %v712_v2 = vld [vmem:[%s1932_s24 + $0x48] sm:$0xff] }
 0x15e   : > { %v1543_v8 = vpop.eup %1542 }
 0x15f   : > { %v635_v10 = vsel %vm1984_vm2, %v584_v39, %v619_v5  ;;  %v589_v55 = vadd.f32 %v2010_v51, %v1319_v6  ;;  %v1320_v11 = vpop.f32.mrb[28].mxu0  ;;  %v2083_v12 = vsel %vm1984_vm2, %v1541_v60, %v679_v7  ;;  %v664_v13 = vmul.f32 0.5, %v1543_v8  ;;  %v706_v60 = vld [vmem:[%s1932_s24 + $0x18] sm:$0xff]  ;;  %v708_v39 = vld [vmem:[%s1932_s24 + $0x28] sm:$0xff]  ;;  %v713_v5 = vld [vmem:[%s1932_s24 + $0x50] sm:$0xff] }
 0x160   : > { %1548 = vtanh.f32 %v635_v10  ;;  %v1321_v14 = vpop.f32.mrb[29].mxu0  ;;  %831 = vrot.lane.b32.xlu0 %v2083_v12, %s1658_s29  ;;  %v714_v6 = vld [vmem:[%s1932_s24 + $0x58] sm:$0xff]  ;;  %v715_v7 = vld [vmem:[%s1932_s24 + $0x60] sm:$0xff]  ;;  %v717_v10 = vld [vmem:[%s1932_s24 + $0x70] sm:$0xff] }
 0x161   : > { %v620_v15 = vmul.f32 0.5, %v589_v55  ;;  %v1322_v16 = vadd.f32 %v1321_v14, %v1320_v11  ;;  %v680_v17 = vadd.f32 0.5, %v664_v13  ;;  %v2165_v11 = vpop.permute.xlu0 %735 }
 0x162   : > { %v1545_v18 = vpop.eup %1544 }
 0x163   : > { %v636_v20 = vsel %vm1984_vm2, %v589_v55, %v620_v15  ;;  %v594_v51 = vadd.f32 %v1322_v16, %v2024_v4  ;;  %v1323_v21 = vpop.f32.mrb[30].mxu0  ;;  %v2092_v22 = vsel %vm1984_vm2, %v1543_v8, %v680_v17  ;;  %v665_v23 = vmul.f32 0.5, %v1545_v18  ;;  %v716_v8 = vld [vmem:[%s1932_s24 + $0x68] sm:$0xff]  ;;  %v718_v55 = vld [vmem:[%s1932_s24 + $0x78] sm:$0xff]  ;;  %v2169_v15 = vpop.permute.xlu1 %737 }
 0x164   : > { %1550 = vtanh.f32 %v636_v20  ;;  %v1324_v24 = vpop.f32.mrb[31].mxu0  ;;  %833 = vrot.lane.b32.xlu1 %v2092_v22, %s1658_s29 }
 0x165   : > { %v621_v25 = vmul.f32 0.5, %v594_v51  ;;  %v1325_v26 = vadd.f32 %v1324_v24, %v1323_v21  ;;  %v681_v27 = vadd.f32 0.5, %v665_v23 }
 0x166   : > { %v1547_v28 = vpop.eup %1546 }
 0x167   : > { %v637_v31 = vsel %vm1984_vm2, %v594_v51, %v621_v25  ;;  %v599_v4 = vadd.f32 %v2022_v63, %v1325_v26  ;;  %v2101_v32 = vsel %vm1984_vm2, %v1545_v18, %v681_v27  ;;  %v666_v33 = vmul.f32 0.5, %v1547_v28 }
 0x168   : > { %1552 = vtanh.f32 %v637_v31  ;;  %835 = vrot.lane.b32.xlu0 %v2101_v32, %s1658_s29 }
 0x169   : > { %v622_v34 = vmul.f32 0.5, %v599_v4  ;;  %v682_v35 = vadd.f32 0.5, %v666_v33 }
 0x16a   : > { %v1549_v36 = vpop.eup %1548 }
 0x16b   : > { %v638_v37 = vsel %vm1984_vm2, %v599_v4, %v622_v34  ;;  %v2109_v29 = vsel %vm1984_vm2, %v1547_v28, %v682_v35  ;;  %v667_v63 = vmul.f32 0.5, %v1549_v36 }
 0x16c   : > { %1554 = vtanh.f32 %v638_v37  ;;  %837 = vrot.lane.b32.xlu1 %v2109_v29, %s1658_s29 }
 0x16d   : > { %v683_v38 = vadd.f32 0.5, %v667_v63 }
 0x16e   : > { %v1551_v41 = vpop.eup %1550 }
 0x16f   : > { %v2115_v42 = vsel %vm1984_vm2, %v1549_v36, %v683_v38  ;;  %v668_v44 = vmul.f32 0.5, %v1551_v41 }
 0x170   : > { %839 = vrot.lane.b32.xlu0 %v2115_v42, %s1658_s29 }
 0x171   : > { %v684_v45 = vadd.f32 0.5, %v668_v44 }
 0x172   : > { %v1553_v46 = vpop.eup %1552 }
 0x173   : > { %v2121_v48 = vsel %vm1984_vm2, %v1551_v41, %v684_v45  ;;  %v669_v49 = vmul.f32 0.5, %v1553_v46 }
 0x174   : > { %841 = vrot.lane.b32.xlu1 %v2121_v48, %s1658_s29 }
 0x175   : > { %v685_v43 = vadd.f32 0.5, %v669_v49 }
 0x176   : > { %v1555_v50 = vpop.eup %1554 }
 0x177   : > { %v2127_v53 = vsel %vm1984_vm2, %v1553_v46, %v685_v43  ;;  %v670_v54 = vmul.f32 0.5, %v1555_v50 }
 0x178   : > { %843 = vrot.lane.b32.xlu0 %v2127_v53, %s1658_s29 }
 0x179   : > { %v686_v56 = vadd.f32 0.5, %v670_v54 }
 0x17b   : > { %v2134_v58 = vsel %vm1984_vm2, %v1555_v50, %v686_v56 }
 0x17c   : > { %845 = vrot.lane.b32.xlu1 %v2134_v58, %s1658_s29  ;;  %739 = vrot.lane.b32.xlu0 %v705_v57, %s1657_s26 }
 0x180   : > { %741 = vrot.lane.b32.xlu1 %v706_v60, %s1657_s26  ;;  %743 = vrot.lane.b32.xlu0 %v707_v61, %s1657_s26 }
 0x184   : > { %745 = vrot.lane.b32.xlu1 %v708_v39, %s1657_s26  ;;  %747 = vrot.lane.b32.xlu0 %v709_v3, %s1657_s26 }
 0x188   : > { %749 = vrot.lane.b32.xlu1 %v710_v62, %s1657_s26  ;;  %751 = vrot.lane.b32.xlu0 %v711_v1, %s1657_s26 }
 0x18c   : > { %753 = vrot.lane.b32.xlu1 %v712_v2, %s1657_s26  ;;  %755 = vrot.lane.b32.xlu0 %v713_v5, %s1657_s26 }
 0x190   : > { %757 = vrot.lane.b32.xlu1 %v714_v6, %s1657_s26  ;;  %759 = vrot.lane.b32.xlu0 %v715_v7, %s1657_s26 }
 0x194   : > { %761 = vrot.lane.b32.xlu1 %v716_v8, %s1657_s26  ;;  %763 = vrot.lane.b32.xlu0 %v717_v10, %s1657_s26 }
 0x198   : > { %765 = vrot.lane.b32.xlu1 %v718_v55, %s1657_s26  ;;  %v783_v55 = vmul.f32 %v2165_v11, %v2006_v47 }
 0x1b2   : > { %v816_v13 = vpop.permute.xlu0 %815 }
 0x1b3   : > { %v863_v14 = vmul.f32 %v816_v13, %v2006_v47 }
 0x1b5   : > { %895 = vrot.lane.b32.xlu0 %v863_v14, %s1657_s26 }
 0x1b6   : > { %v818_v16 = vpop.permute.xlu0 %817 }
 0x1b7   : > { %v864_v17 = vmul.f32 %v818_v16, %v2018_v59 }
 0x1b9   : > { %897 = vrot.lane.b32.xlu1 %v864_v17, %s1657_s26  ;;  %v784_v17 = vmul.f32 %v2169_v15, %v2018_v59 }
 0x1ba   : > { %v820_v18 = vpop.permute.xlu1 %819 }
 0x1bb   : > { %v865_v20 = vmul.f32 %v820_v18, %v2030_v9 }
 0x1bd   : > { %899 = vrot.lane.b32.xlu0 %v865_v20, %s1657_s26 }
 0x1be   : > { %v822_v51 = vpop.permute.xlu1 %821 }
 0x1bf   : > { %v866_v21 = vmul.f32 %v822_v51, %v2038_v19 }
 0x1c1   : > { %901 = vrot.lane.b32.xlu1 %v866_v21, %s1657_s26 }
 0x1c2   : > { %v824_v23 = vpop.permute.xlu0 %823 }
 0x1c3   : > { %v867_v24 = vmul.f32 %v824_v23, %v2047_v30 }
 0x1c5   : > { %903 = vrot.lane.b32.xlu0 %v867_v24, %s1657_s26 }
 0x1c6   : > { %v826_v25 = vpop.permute.xlu1 %825 }
 0x1c7   : > { %v868_v26 = vmul.f32 %v826_v25, %v2056_v40 }
 0x1c9   : > { %905 = vrot.lane.b32.xlu1 %v868_v26, %s1657_s26 }
 0x1ca   : > { %v828_v27 = vpop.permute.xlu0 %827 }
 0x1cb   : > { %v869_v28 = vmul.f32 %v828_v27, %v2065_v52 }
 0x1cd   : > { %907 = vrot.lane.b32.xlu0 %v869_v28, %s1657_s26 }
 0x1ce   : > { %v830_v31 = vpop.permute.xlu1 %829 }
 0x1cf   : > { %v870_v4 = vmul.f32 %v830_v31, %v2074_v0 }
 0x1d1   : > { %909 = vrot.lane.b32.xlu1 %v870_v4, %s1657_s26 }
 0x1d2   : > { %v832_v33 = vpop.permute.xlu0 %831 }
 0x1d3   : > { %v871_v34 = vmul.f32 %v832_v33, %v2083_v12 }
 0x1d5   : > { %911 = vrot.lane.b32.xlu0 %v871_v34, %s1657_s26 }
 0x1d6   : > { %v834_v35 = vpop.permute.xlu1 %833 }
 0x1d7   : > { %v872_v36 = vmul.f32 %v834_v35, %v2092_v22 }
 0x1d9   : > { %913 = vrot.lane.b32.xlu1 %v872_v36, %s1657_s26 }
 0x1da   : > { %v836_v37 = vpop.permute.xlu0 %835 }
 0x1db   : > { %v873_v63 = vmul.f32 %v836_v37, %v2101_v32 }
 0x1dd   : > { %915 = vrot.lane.b32.xlu0 %v873_v63, %s1657_s26 }
 0x1de   : > { %v838_v38 = vpop.permute.xlu1 %837 }
 0x1df   : > { %v874_v41 = vmul.f32 %v838_v38, %v2109_v29 }
 0x1e1   : > { %917 = vrot.lane.b32.xlu1 %v874_v41, %s1657_s26 }
 0x1e2   : > { %v840_v44 = vpop.permute.xlu0 %839 }
 0x1e3   : > { %v875_v45 = vmul.f32 %v840_v44, %v2115_v42 }
 0x1e5   : > { %919 = vrot.lane.b32.xlu0 %v875_v45, %s1657_s26 }
 0x1e6   : > { %v842_v46 = vpop.permute.xlu1 %841 }
 0x1e7   : > { %v876_v49 = vmul.f32 %v842_v46, %v2121_v48 }
 0x1e9   : > { %921 = vrot.lane.b32.xlu1 %v876_v49, %s1657_s26 }
 0x1ea   : > { %v844_v43 = vpop.permute.xlu0 %843 }
 0x1eb   : > { %v877_v50 = vmul.f32 %v844_v43, %v2127_v53 }
 0x1ed   : > { %923 = vrot.lane.b32.xlu0 %v877_v50, %s1657_s26 }
 0x1ee   : > { %v846_v54 = vpop.permute.xlu1 %845  ;;  %v740_v57 = vpop.permute.xlu0 %739 }
 0x1ef   : > { %v878_v56 = vmul.f32 %v846_v54, %v2134_v58  ;;  %v785_v51 = vmul.f32 %v740_v57, %v2030_v9 }
 0x1f1   : > { %925 = vrot.lane.b32.xlu1 %v878_v56, %s1657_s26 }
 0x1f2   : > { %v742_v60 = vpop.permute.xlu1 %741  ;;  %v744_v61 = vpop.permute.xlu0 %743 }
 0x1f3   : > { %v786_v11 = vmul.f32 %v742_v60, %v2038_v19  ;;  %v787_v15 = vmul.f32 %v744_v61, %v2047_v30 }
 0x1f6   : > { %v746_v39 = vpop.permute.xlu1 %745  ;;  %v748_v3 = vpop.permute.xlu0 %747 }
 0x1f7   : > { %v788_v4 = vmul.f32 %v746_v39, %v2056_v40  ;;  %v789_v36 = vmul.f32 %v748_v3, %v2065_v52 }
 0x1fa   : > { %v750_v62 = vpop.permute.xlu1 %749  ;;  %v752_v1 = vpop.permute.xlu0 %751 }
 0x1fb   : > { %v790_v41 = vmul.f32 %v750_v62, %v2074_v0  ;;  %v791_v49 = vmul.f32 %v752_v1, %v2083_v12 }
 0x1fe   : > { %v754_v2 = vpop.permute.xlu1 %753  ;;  %v756_v5 = vpop.permute.xlu0 %755 }
 0x1ff   : > { %v792_v56 = vmul.f32 %v754_v2, %v2092_v22  ;;  %v793_v39 = vmul.f32 %v756_v5, %v2101_v32 }
 0x202   : > { %v2201_v6 = vpop.permute.xlu1 %757  ;;  %v2203_v7 = vpop.permute.xlu0 %759 }
 0x203   : > { %v794_v2 = vmul.f32 %v2201_v6, %v2109_v29  ;;  %v795_v5 = vmul.f32 %v2203_v7, %v2115_v42 }
 0x206   : > { %v2205_v8 = vpop.permute.xlu1 %761  ;;  %v2207_v10 = vpop.permute.xlu0 %763 }
 0x207   : > { %v796_v6 = vmul.f32 %v2205_v8, %v2121_v48  ;;  %v797_v7 = vmul.f32 %v2207_v10, %v2127_v53 }
 0x20a   : > { %v2211_v13 = vpop.permute.xlu1 %765 }
 0x20b   : > { %v798_v8 = vmul.f32 %v2211_v13, %v2134_v58 }
 0x227   : > { %v896_v14 = vpop.permute.xlu0 %895 }
 0x228   : > { %v2213_v16 = vadd.f32 %v896_v14, %v783_v55 }
 0x22a   : > { %1556 = vtanh.f32 %v2213_v16 }
 0x22b   : > { %v898_v18 = vpop.permute.xlu1 %897 }
 0x22c   : > { %v2218_v20 = vadd.f32 %v898_v18, %v784_v17 }
 0x22e   : > { %1558 = vtanh.f32 %v2218_v20 }
 0x22f   : > { %v900_v21 = vpop.permute.xlu0 %899 }
 0x230   : > { %v2222_v23 = vadd.f32 %v900_v21, %v785_v51 }
 0x232   : > { %1560 = vtanh.f32 %v2222_v23 }
 0x233   : > { %v902_v24 = vpop.permute.xlu1 %901 }
 0x234   : > { %v1557_v25 = vpop.eup %1556  ;;  %v2226_v26 = vadd.f32 %v902_v24, %v786_v11 }
 0x235   : > { %991 = vrot.lane.b32.xlu0 %v1557_v25, %s1658_s29 }
 0x236   : > { %1562 = vtanh.f32 %v2226_v26 }
 0x237   : > { %v904_v27 = vpop.permute.xlu0 %903 }
 0x238   : > { %v1559_v28 = vpop.eup %1558  ;;  %v2231_v31 = vadd.f32 %v904_v27, %v787_v15 }
 0x239   : > { %993 = vrot.lane.b32.xlu1 %v1559_v28, %s1658_s29 }
 0x23a   : > { %1564 = vtanh.f32 %v2231_v31 }
 0x23b   : > { %v906_v33 = vpop.permute.xlu1 %905 }
 0x23c   : > { %v1561_v34 = vpop.eup %1560  ;;  %v2236_v35 = vadd.f32 %v906_v33, %v788_v4 }
 0x23d   : > { %995 = vrot.lane.b32.xlu0 %v1561_v34, %s1658_s29 }
 0x23e   : > { %1566 = vtanh.f32 %v2236_v35 }
 0x23f   : > { %v908_v37 = vpop.permute.xlu0 %907 }
 0x240   : > { %v1563_v63 = vpop.eup %1562  ;;  %v2241_v38 = vadd.f32 %v908_v37, %v789_v36 }
 0x241   : > { %997 = vrot.lane.b32.xlu1 %v1563_v63, %s1658_s29 }
 0x242   : > { %1568 = vtanh.f32 %v2241_v38 }
 0x243   : > { %v910_v44 = vpop.permute.xlu1 %909 }
 0x244   : > { %v1565_v45 = vpop.eup %1564  ;;  %v2246_v46 = vadd.f32 %v910_v44, %v790_v41 }
 0x245   : > { %999 = vrot.lane.b32.xlu0 %v1565_v45, %s1658_s29 }
 0x246   : > { %1570 = vtanh.f32 %v2246_v46 }
 0x247   : > { %v912_v43 = vpop.permute.xlu0 %911 }
 0x248   : > { %v1567_v50 = vpop.eup %1566  ;;  %v2251_v54 = vadd.f32 %v912_v43, %v791_v49 }
 0x249   : > { %1001 = vrot.lane.b32.xlu1 %v1567_v50, %s1658_s29 }
 0x24a   : > { %1572 = vtanh.f32 %v2251_v54 }
 0x24b   : > { %v914_v57 = vpop.permute.xlu1 %913 }
 0x24c   : > { %v1569_v60 = vpop.eup %1568  ;;  %v2256_v61 = vadd.f32 %v914_v57, %v792_v56 }
 0x24d   : > { %1003 = vrot.lane.b32.xlu0 %v1569_v60, %s1658_s29 }
 0x24e   : > { %1574 = vtanh.f32 %v2256_v61 }
 0x24f   : > { %v916_v3 = vpop.permute.xlu0 %915 }
 0x250   : > { %v1571_v62 = vpop.eup %1570  ;;  %v2261_v1 = vadd.f32 %v916_v3, %v793_v39 }
 0x251   : > { %1005 = vrot.lane.b32.xlu1 %v1571_v62, %s1658_s29 }
 0x252   : > { %1576 = vtanh.f32 %v2261_v1 }
 0x253   : > { %v918_v55 = vpop.permute.xlu1 %917 }
 0x254   : > { %v1573_v14 = vpop.eup %1572  ;;  %v2267_v17 = vadd.f32 %v918_v55, %v794_v2 }
 0x255   : > { %1007 = vrot.lane.b32.xlu0 %v1573_v14, %s1658_s29 }
 0x256   : > { %1578 = vtanh.f32 %v2267_v17 }
 0x257   : > { %v920_v18 = vpop.permute.xlu0 %919 }
 0x258   : > { %v1575_v51 = vpop.eup %1574  ;;  %v2273_v21 = vadd.f32 %v920_v18, %v795_v5 }
 0x259   : > { %1009 = vrot.lane.b32.xlu1 %v1575_v51, %s1658_s29 }
 0x25a   : > { %1580 = vtanh.f32 %v2273_v21 }
 0x25b   : > { %v922_v11 = vpop.permute.xlu1 %921 }
 0x25c   : > { %v1577_v24 = vpop.eup %1576  ;;  %v2279_v25 = vadd.f32 %v922_v11, %v796_v6 }
 0x25d   : > { %1011 = vrot.lane.b32.xlu0 %v1577_v24, %s1658_s29 }
 0x25e   : > { %1582 = vtanh.f32 %v2279_v25 }
 0x25f   : > { %v924_v15 = vpop.permute.xlu0 %923 }
 0x260   : > { %v1579_v27 = vpop.eup %1578  ;;  %v2285_v28 = vadd.f32 %v924_v15, %v797_v7 }
 0x261   : > { %1013 = vrot.lane.b32.xlu1 %v1579_v27, %s1658_s29 }
 0x262   : > { %1584 = vtanh.f32 %v2285_v28 }
 0x263   : > { %v926_v4 = vpop.permute.xlu1 %925 }
 0x264   : > { %v1581_v33 = vpop.eup %1580  ;;  %v2291_v34 = vadd.f32 %v926_v4, %v798_v8 }
 0x265   : > { %1015 = vrot.lane.b32.xlu0 %v1581_v33, %s1658_s29 }
 0x266   : > { %1586 = vtanh.f32 %v2291_v34 }
 0x268   : > { %v1583_v10 = vpop.eup %1582 }
 0x269   : > { %1017 = vrot.lane.b32.xlu1 %v1583_v10, %s1658_s29 }
 0x26c   : > { %v1585_v36 = vpop.eup %1584 }
 0x26d   : > { %1019 = vrot.lane.b32.xlu0 %v1585_v36, %s1658_s29 }
 0x270   : > { %v1587_v37 = vpop.eup %1586 }
 0x271   : > { %1021 = vrot.lane.b32.xlu1 %v1587_v37, %s1658_s29 }
 0x2a7   : > { %v992_v13 = vpop.permute.xlu0 %991 }
 0x2a8   : > { %v1039_v63 = vmul.f32 %v992_v13, %v2006_v47 }
 0x2aa   : > { %1071 = vrot.lane.b32.xlu0 %v1039_v63, %s1657_s26 }
 0x2ab   : > { %v994_v41 = vpop.permute.xlu1 %993 }
 0x2ac   : > { %v1040_v44 = vmul.f32 %v994_v41, %v2018_v59 }
 0x2ae   : > { %1073 = vrot.lane.b32.xlu1 %v1040_v44, %s1657_s26 }
 0x2af   : > { %v996_v45 = vpop.permute.xlu0 %995 }
 0x2b0   : > { %v1041_v49 = vmul.f32 %v996_v45, %v2030_v9 }
 0x2b2   : > { %1075 = vrot.lane.b32.xlu0 %v1041_v49, %s1657_s26 }
 0x2b3   : > { %v998_v43 = vpop.permute.xlu1 %997 }
 0x2b4   : > { %v1042_v50 = vmul.f32 %v998_v43, %v2038_v19 }
 0x2b6   : > { %1077 = vrot.lane.b32.xlu1 %v1042_v50, %s1657_s26 }
 0x2b7   : > { %v1000_v56 = vpop.permute.xlu0 %999 }
 0x2b8   : > { %v1043_v47 = vmul.f32 %v1000_v56, %v2047_v30 }
 0x2ba   : > { %1079 = vrot.lane.b32.xlu0 %v1043_v47, %s1657_s26 }
 0x2bb   : > { %v1002_v57 = vpop.permute.xlu1 %1001 }
 0x2bc   : > { %v1044_v59 = vmul.f32 %v1002_v57, %v2056_v40 }
 0x2be   : > { %1081 = vrot.lane.b32.xlu1 %v1044_v59, %s1657_s26 }
 0x2bf   : > { %v1004_v60 = vpop.permute.xlu0 %1003 }
 0x2c0   : > { %v1045_v9 = vmul.f32 %v1004_v60, %v2065_v52 }
 0x2c2   : > { %1083 = vrot.lane.b32.xlu0 %v1045_v9, %s1657_s26 }
 0x2c3   : > { %v1006_v39 = vpop.permute.xlu1 %1005 }
 0x2c4   : > { %v1046_v19 = vmul.f32 %v1006_v39, %v2074_v0 }
 0x2c6   : > { %1085 = vrot.lane.b32.xlu1 %v1046_v19, %s1657_s26 }
 0x2c7   : > { %v1008_v3 = vpop.permute.xlu0 %1007 }
 0x2c8   : > { %v1047_v30 = vmul.f32 %v1008_v3, %v2083_v12 }
 0x2ca   : > { %1087 = vrot.lane.b32.xlu0 %v1047_v30, %s1657_s26 }
 0x2cb   : > { %v1010_v62 = vpop.permute.xlu1 %1009 }
 0x2cc   : > { %v1048_v40 = vmul.f32 %v1010_v62, %v2092_v22 }
 0x2ce   : > { %1089 = vrot.lane.b32.xlu1 %v1048_v40, %s1657_s26 }
 0x2cf   : > { %v1012_v2 = vpop.permute.xlu0 %1011 }
 0x2d0   : > { %v1049_v52 = vmul.f32 %v1012_v2, %v2101_v32 }
 0x2d2   : > { %1091 = vrot.lane.b32.xlu0 %v1049_v52, %s1657_s26 }
 0x2d3   : > { %v1014_v55 = vpop.permute.xlu1 %1013 }
 0x2d4   : > { %v1050_v0 = vmul.f32 %v1014_v55, %v2109_v29 }
 0x2d6   : > { %1093 = vrot.lane.b32.xlu1 %v1050_v0, %s1657_s26 }
 0x2d7   : > { %v1016_v14 = vpop.permute.xlu0 %1015 }
 0x2d8   : > { %v1051_v12 = vmul.f32 %v1016_v14, %v2115_v42 }
 0x2da   : > { %1095 = vrot.lane.b32.xlu0 %v1051_v12, %s1657_s26 }
 0x2db   : > { %v1018_v5 = vpop.permute.xlu1 %1017 }
 0x2dc   : > { %v1052_v22 = vmul.f32 %v1018_v5, %v2121_v48 }
 0x2de   : > { %1097 = vrot.lane.b32.xlu1 %v1052_v22, %s1657_s26 }
 0x2df   : > { %v1020_v18 = vpop.permute.xlu0 %1019 }
 0x2e0   : > { %v1053_v32 = vmul.f32 %v1020_v18, %v2127_v53 }
 0x2e2   : > { %1099 = vrot.lane.b32.xlu0 %v1053_v32, %s1657_s26 }
 0x2e3   : > { %v1022_v51 = vpop.permute.xlu1 %1021 }
 0x2e4   : > { %v1054_v29 = vmul.f32 %v1022_v51, %v2134_v58 }
 0x2e6   : > { %1101 = vrot.lane.b32.xlu1 %v1054_v29, %s1657_s26 }
 0x31c   : > { %v1072_v42 = vpop.permute.xlu0 %1071 }
 0x31d   : > { %v1120_v48 = vsel %vm1119_vm3, %v1072_v42, %v2213_v16 }
 0x31e   : > { %1137 = vst.msk [vmem:[%s2335_s6] sm:$0xff] %vm1136_vm4, %v1120_v48 }
 0x320   : > { %v1074_v53 = vpop.permute.xlu1 %1073 }
 0x321   : > { %v1121_v58 = vsel %vm1119_vm3, %v1074_v53, %v2218_v20 }
 0x322   : > { %1138 = vst.msk [vmem:[%s2335_s6 + $0x8] sm:$0xff] %vm1136_vm4, %v1121_v58 }
 0x324   : > { %v1076_v6 = vpop.permute.xlu0 %1075 }
 0x325   : > { %v1122_v11 = vsel %vm1119_vm3, %v1076_v6, %v2222_v23 }
 0x326   : > { %1139 = vst.msk [vmem:[%s2335_s6 + $0x10] sm:$0xff] %vm1136_vm4, %v1122_v11 }
 0x328   : > { %v1078_v24 = vpop.permute.xlu1 %1077 }
 0x329   : > { %v1123_v16 = vsel %vm1119_vm3, %v1078_v24, %v2226_v26 }
 0x32a   : > { %1140 = vst.msk [vmem:[%s2335_s6 + $0x18] sm:$0xff] %vm1136_vm4, %v1123_v16 }
 0x32c   : > { %v1080_v7 = vpop.permute.xlu0 %1079 }
 0x32d   : > { %v1124_v20 = vsel %vm1119_vm3, %v1080_v7, %v2231_v31 }
 0x32e   : > { %1141 = vst.msk [vmem:[%s2335_s6 + $0x20] sm:$0xff] %vm1136_vm4, %v1124_v20 }
 0x330   : > { %v1082_v15 = vpop.permute.xlu1 %1081 }
 0x331   : > { %v1125_v23 = vsel %vm1119_vm3, %v1082_v15, %v2236_v35 }
 0x332   : > { %1142 = vst.msk [vmem:[%s2335_s6 + $0x28] sm:$0xff] %vm1136_vm4, %v1125_v23 }
 0x334   : > { %v1084_v27 = vpop.permute.xlu0 %1083 }
 0x335   : > { %v1126_v26 = vsel %vm1119_vm3, %v1084_v27, %v2241_v38 }
 0x336   : > { %1143 = vst.msk [vmem:[%s2335_s6 + $0x30] sm:$0xff] %vm1136_vm4, %v1126_v26 }
 0x338   : > { %v1086_v8 = vpop.permute.xlu1 %1085 }
 0x339   : > { %v1127_v31 = vsel %vm1119_vm3, %v1086_v8, %v2246_v46 }
 0x33a   : > { %1144 = vst.msk [vmem:[%s2335_s6 + $0x38] sm:$0xff] %vm1136_vm4, %v1127_v31 }
 0x33c   : > { %v1088_v4 = vpop.permute.xlu0 %1087 }
 0x33d   : > { %v1128_v35 = vsel %vm1119_vm3, %v1088_v4, %v2251_v54 }
 0x33e   : > { %1145 = vst.msk [vmem:[%s2335_s6 + $0x40] sm:$0xff] %vm1136_vm4, %v1128_v35 }
 0x340   : > { %v1090_v33 = vpop.permute.xlu1 %1089 }
 0x341   : > { %v1129_v38 = vsel %vm1119_vm3, %v1090_v33, %v2256_v61 }
 0x342   : > { %1146 = vst.msk [vmem:[%s2335_s6 + $0x48] sm:$0xff] %vm1136_vm4, %v1129_v38 }
 0x344   : > { %v1092_v10 = vpop.permute.xlu0 %1091 }
 0x345   : > { %v1130_v46 = vsel %vm1119_vm3, %v1092_v10, %v2261_v1 }
 0x346   : > { %1147 = vst.msk [vmem:[%s2335_s6 + $0x50] sm:$0xff] %vm1136_vm4, %v1130_v46 }
 0x348   : > { %v1094_v36 = vpop.permute.xlu1 %1093 }
 0x349   : > { %v1131_v54 = vsel %vm1119_vm3, %v1094_v36, %v2267_v17 }
 0x34a   : > { %1148 = vst.msk [vmem:[%s2335_s6 + $0x58] sm:$0xff] %vm1136_vm4, %v1131_v54 }
 0x34c   : > { %v1096_v37 = vpop.permute.xlu0 %1095 }
 0x34d   : > { %v1132_v61 = vsel %vm1119_vm3, %v1096_v37, %v2273_v21 }
 0x34e   : > { %1149 = vst.msk [vmem:[%s2335_s6 + $0x60] sm:$0xff] %vm1136_vm4, %v1132_v61 }
 0x350   : > { %v1098_v13 = vpop.permute.xlu1 %1097 }
 0x351   : > { %v1133_v63 = vsel %vm1119_vm3, %v1098_v13, %v2279_v25 }
 0x352   : > { %1150 = vst.msk [vmem:[%s2335_s6 + $0x68] sm:$0xff] %vm1136_vm4, %v1133_v63 }
 0x354   : > { %v1100_v1 = vpop.permute.xlu0 %1099 }
 0x355   : > { %v1134_v41 = vsel %vm1119_vm3, %v1100_v1, %v2285_v28 }
 0x356   : > { %1151 = vst.msk [vmem:[%s2335_s6 + $0x70] sm:$0xff] %vm1136_vm4, %v1134_v41 }
 0x358   : > { %v1102_v17 = vpop.permute.xlu1 %1101 }
 0x359   : > { %v1135_v44 = vsel %vm1119_vm3, %v1102_v17, %v2291_v34 }
 0x35a   : > { %1152 = vst.msk [vmem:[%s2335_s6 + $0x78] sm:$0xff] %vm1136_vm4, %v1135_v44 }
 0x35b PF: > { %p13_p8 = scmp.ge.s32.totalorder %s1699_s17, 6   ;;  %s2423_s12 = smov %s1644_s13 }
 0x35c   : > { %s2424_s13 = smov %s1648_s14  ;;  %s2425_s14 = smov %s1709_s20 }
 0x35d   : > { %s2426_s15 = smov %s1699_s17  ;;  %15 = sbr.rel (!%p13_p8) target bundleno = 3 (0x3), region = 75 }
 0x364   :  { %1175 = vsyncpa [#allocation3], 1 }
 0x365   :  { %1177 = vsyncpa [#allocation3 + $0x1], 1 }

</bundles_post_ra>
